<compile_context>
chip_gen: v7x
topology: tpu7x:2x2x1
jax: 0.10.0
libtpu: 0.0.40
codegen_flags: <defaults>
</compile_context>

<pallas_src>
import functools

import jax
import jax.numpy as jnp
from jax.experimental import pallas as pl
from jax.experimental.pallas import tpu as pltpu

EMBEDDING_SIZE = 100
NUM_LSTM_LAYERS = 1


def _round_up(x, m):
    return ((x + m - 1) // m) * m


def _permute_gates_ifog(m, hidden):
    """Permute last-axis gate columns from PyTorch [i|f|g|o] to [i|f|o|g]."""
    H = hidden
    return jnp.concatenate(
        [m[..., 0:2 * H], m[..., 3 * H:4 * H], m[..., 2 * H:3 * H]], axis=-1)


def lstm_kernel(tok_ref, table_ref, whh_ref, out_ref,
                *, seq_len, batch_pad, hidden, vocab_pad):
    """Single-invocation Embedding+LSTM.

    tok_ref   : (T*Bp, 1)  int32, time-major tokens (batch-padded with 0)
    table_ref : (Vp, 4H)   emb4h = embedding @ W_ih^T + (b_ih+b_hh),
                           columns in gate order [i|f|o|g], zero row-padded
    whh_ref   : (H, 4H)    W_hh^T, columns in gate order [i|f|o|g]
    out_ref   : (Bp, (T+1)*H)  row b = [h_0[b] | ... | h_{T-1}[b] | c_T[b]]
    """
    T, Bp, H, Vp = seq_len, batch_pad, hidden, vocab_pad

    # Fused embedding lookup + input projection: one-hot row gather expressed
    # as a single small MXU matmul (all timesteps at once, off the serial path).
    tok = tok_ref[...]                                              # (T*Bp, 1)
    lane = jax.lax.broadcasted_iota(jnp.int32, (T * Bp, Vp), 1)     # (T*Bp, Vp)
    onehot = (tok == lane).astype(jnp.float32)
    gx = jnp.dot(onehot, table_ref[...],
                 preferred_element_type=jnp.float32)                # (T*Bp, 4H)

    whh = whh_ref[...]                                              # (H, 4H)

    h = jnp.zeros((Bp, H), jnp.float32)
    c = jnp.zeros((Bp, H), jnp.float32)
    hs = []

    # Fully unrolled static time loop (T small & static): only the small
    # (Bp,H)x(H,4H) matmul + gate elementwise sit on the serial critical path.
    # TODO(synk): for large T switch to lax.fori_loop(unroll=4-8) storing h_t
    # into VMEM scratch and add a T-chunk grid axis to bound vreg/VMEM pressure.
    for t in range(T):
        gates = gx[t * Bp:(t + 1) * Bp, :] + jnp.dot(
            h, whh, preferred_element_type=jnp.float32)             # (Bp, 4H)
        # Gate order [i | f | o | g]: one sigmoid over 3H lanes + one tanh.
        ifo = jax.nn.sigmoid(gates[:, 0:3 * H])
        g_g = jnp.tanh(gates[:, 3 * H:4 * H])
        i_g = ifo[:, 0:H]
        f_g = ifo[:, H:2 * H]
        o_g = ifo[:, 2 * H:3 * H]
        c = f_g * c + i_g * g_g
        h = o_g * jnp.tanh(c)
        hs.append(h)

    # Single lane-dense store of all timesteps + final cell state.
    hs.append(c)
    out_ref[...] = jnp.concatenate(hs, axis=-1).astype(out_ref.dtype)


def init_encoder_params(key, vocab_size, hidden_size):
    """Deterministic synthetic parameters with the same shapes/layout as PyTorch."""
    k_emb, k_wih, k_whh, k_bih, k_bhh = jax.random.split(key, 5)
    E, H = EMBEDDING_SIZE, hidden_size
    scale = 1.0 / jnp.sqrt(H)
    return {
        "embedding": jax.random.normal(k_emb, (vocab_size, E), jnp.float32),
        # Stored already transposed: x @ W_ih^T -> x @ (E, 4H).  Gate order [i|f|g|o].
        "w_ih_t": jax.random.uniform(k_wih, (E, 4 * H), jnp.float32, -scale, scale),
        "w_hh_t": jax.random.uniform(k_whh, (H, 4 * H), jnp.float32, -scale, scale),
        "b_ih": jax.random.uniform(k_bih, (4 * H,), jnp.float32, -scale, scale),
        "b_hh": jax.random.uniform(k_bhh, (4 * H,), jnp.float32, -scale, scale),
    }


def prepare_encoder_params(params):
    """One-time (per weight load) kernel-side parameter prep.

    Precomputes the fused embedding/input-projection table and permutes gate
    columns to [i|f|o|g].  This runs once, outside the jitted forward.
    """
    H = params["w_hh_t"].shape[0]
    V = params["embedding"].shape[0]
    Vp = _round_up(V, 128)

    bias = params["b_ih"] + params["b_hh"]
    emb4h = params["embedding"] @ params["w_ih_t"] + bias          # (V, 4H), f32
    emb4h = _permute_gates_ifog(emb4h, H)
    emb4h = jnp.pad(emb4h, ((0, Vp - V), (0, 0)))                  # (Vp, 4H)
    w_hh_t = _permute_gates_ifog(params["w_hh_t"], H)              # (H, 4H)
    return {"emb4h": emb4h, "w_hh_t": w_hh_t}


@jax.jit
def encoder_forward(tokens, kparams):
    """tokens: int32 (B, T) -> (output (B, T, H), (h_n (1,B,H), c_n (1,B,H)))."""
    B, T = tokens.shape
    H = kparams["w_hh_t"].shape[0]
    Vp = kparams["emb4h"].shape[0]
    Bp = _round_up(B, 8)

    # Time-major token layout; pad batch with token 0 (padded rows stripped below).
    tokens_tm = jnp.pad(tokens.T, ((0, 0), (0, Bp - B)))           # (T, Bp)
    tok2d = tokens_tm.reshape(T * Bp, 1).astype(jnp.int32)

    kernel = functools.partial(lstm_kernel, seq_len=T, batch_pad=Bp,
                               hidden=H, vocab_pad=Vp)
    vmem = pl.BlockSpec(memory_space=pltpu.MemorySpace.VMEM)

    out2d = pl.pallas_call(
        kernel,
        out_shape=jax.ShapeDtypeStruct((Bp, (T + 1) * H), jnp.float32),
        in_specs=[vmem, vmem, vmem],
        out_specs=vmem,
    )(tok2d, kparams["emb4h"], kparams["w_hh_t"])

    # (Bp, (T+1)*H) -> batch_first (B, T, H); final cell state in the last slab.
    output = out2d[:B, :T * H].reshape(B, T, H)
    h_n = output[:, -1, :][None]                                   # (1, B, H)
    c_n = out2d[:B, T * H:(T + 1) * H][None]                       # (1, B, H)
    return output, (h_n, c_n)


def encoder_forward_ref(tokens, params):
    """Pure-JAX reference (lax.scan LSTM, PyTorch gate order) for correctness."""
    emb = params["embedding"][tokens]            # (B, T, E)
    H = params["w_hh_t"].shape[0]
    b = params["b_ih"] + params["b_hh"]

    def step(carry, x_t):
        h, c = carry
        gates = x_t @ params["w_ih_t"] + h @ params["w_hh_t"] + b
        i_g = jax.nn.sigmoid(gates[:, 0:H])
        f_g = jax.nn.sigmoid(gates[:, H:2 * H])
        g_g = jnp.tanh(gates[:, 2 * H:3 * H])
        o_g = jax.nn.sigmoid(gates[:, 3 * H:4 * H])
        c_new = f_g * c + i_g * g_g
        h_new = o_g * jnp.tanh(c_new)
        return (h_new, c_new), h_new

    B = tokens.shape[0]
    h0 = jnp.zeros((B, H), jnp.float32)
    c0 = jnp.zeros((B, H), jnp.float32)
    (h_n, c_n), out_tm = jax.lax.scan(step, (h0, c0), jnp.transpose(emb, (1, 0, 2)))
    return jnp.transpose(out_tm, (1, 0, 2)), (h_n[None], c_n[None])


if __name__ == "__main__":
    B, T, H, VOCAB = 2, 8, 32, 50

    key = jax.random.PRNGKey(0)
    k_params, k_tokens = jax.random.split(key)
    params = init_encoder_params(k_params, VOCAB, H)
    kparams = prepare_encoder_params(params)
    tokens = jax.random.randint(k_tokens, (B, T), 0, VOCAB, dtype=jnp.int32)

    output, (h_n, c_n) = encoder_forward(tokens, kparams)
    jax.block_until_ready((output, h_n, c_n))

    out_ref, (h_ref, c_ref) = encoder_forward_ref(tokens, params)
    assert output.shape == (B, T, H)
    assert h_n.shape == (NUM_LSTM_LAYERS, B, H) and c_n.shape == (NUM_LSTM_LAYERS, B, H)
    assert jnp.allclose(output, out_ref, atol=1e-3, rtol=1e-3)
    assert jnp.allclose(h_n, h_ref, atol=1e-3, rtol=1e-3)
    assert jnp.allclose(c_n, c_ref, atol=1e-3, rtol=1e-3)

    print("KERNEL_OK")
</pallas_src>

<mosaic_0001>
module attributes {stable_mosaic.version = 11 : i64} {
  func.func @lstm_kernel(%arg0: memref<64x1xi32, #tpu.memory_space<vmem>>, %arg1: memref<128x128xf32, #tpu.memory_space<vmem>>, %arg2: memref<32x128xf32, #tpu.memory_space<vmem>>, %arg3: memref<8x288xf32, #tpu.memory_space<vmem>>) attributes {dimension_semantics = [], scalar_prefetch = 0 : i64, scratch_operands = 0 : i64, tpu.core_type = #tpu.core_type<tc>} {
    %c0 = arith.constant 0 : index
    %c0_0 = arith.constant 0 : index
    %0 = vector.load %arg0[%c0, %c0_0] : memref<64x1xi32, #tpu.memory_space<vmem>>, vector<64x1xi32>
    %1 = tpu.iota {dimensions = array<i32: 1>} : vector<64x128xi32>
    %2 = vector.broadcast %0 : vector<64x1xi32> to vector<64x128xi32>
    %3 = arith.cmpi eq, %2, %1 : vector<64x128xi32>
    %4 = arith.extui %3 : vector<64x128xi1> to vector<64x128xi32>
    %5 = arith.sitofp %4 : vector<64x128xi32> to vector<64x128xf32>
    %c0_1 = arith.constant 0 : index
    %c0_2 = arith.constant 0 : index
    %6 = vector.load %arg1[%c0_1, %c0_2] : memref<128x128xf32, #tpu.memory_space<vmem>>, vector<128x128xf32>
    %cst = arith.constant dense<0.000000e+00> : vector<64x128xf32>
    %7 = tpu.matmul %5, %6, %cst {dimension_numbers = #tpu.dot_dimension_numbers<[1], [0], [0], [1], [0, 0, 1, 1], [], []>} : vector<64x128xf32>, vector<128x128xf32>, vector<64x128xf32> -> vector<64x128xf32>
    %c0_3 = arith.constant 0 : index
    %c0_4 = arith.constant 0 : index
    %8 = vector.load %arg2[%c0_3, %c0_4] : memref<32x128xf32, #tpu.memory_space<vmem>>, vector<32x128xf32>
    %cst_5 = arith.constant 0.000000e+00 : f32
    %9 = vector.broadcast %cst_5 : f32 to vector<8x32xf32>
    %cst_6 = arith.constant 0.000000e+00 : f32
    %10 = vector.broadcast %cst_6 : f32 to vector<8x32xf32>
    %11 = vector.extract_strided_slice %7 {offsets = [0, 0], sizes = [8, 128], strides = [1, 1]} : vector<64x128xf32> to vector<8x128xf32>
    %cst_7 = arith.constant dense<0.000000e+00> : vector<8x128xf32>
    %12 = tpu.matmul %9, %8, %cst_7 {dimension_numbers = #tpu.dot_dimension_numbers<[1], [0], [0], [1], [0, 0, 1, 1], [], []>} : vector<8x32xf32>, vector<32x128xf32>, vector<8x128xf32> -> vector<8x128xf32>
    %13 = arith.addf %11, %12 : vector<8x128xf32>
    %14 = vector.extract_strided_slice %13 {offsets = [0, 0], sizes = [8, 96], strides = [1, 1]} : vector<8x128xf32> to vector<8x96xf32>
    %15 = arith.negf %14 : vector<8x96xf32>
    %16 = math.exp %15 : vector<8x96xf32>
    %cst_8 = arith.constant 1.000000e+00 : f32
    %17 = vector.broadcast %cst_8 : f32 to vector<8x96xf32>
    %18 = arith.addf %17, %16 : vector<8x96xf32>
    %19 = arith.divf %17, %18 : vector<8x96xf32>
    %20 = vector.extract_strided_slice %13 {offsets = [0, 96], sizes = [8, 32], strides = [1, 1]} : vector<8x128xf32> to vector<8x32xf32>
    %21 = math.tanh %20 : vector<8x32xf32>
    %22 = vector.extract_strided_slice %19 {offsets = [0, 0], sizes = [8, 32], strides = [1, 1]} : vector<8x96xf32> to vector<8x32xf32>
    %23 = vector.extract_strided_slice %19 {offsets = [0, 32], sizes = [8, 32], strides = [1, 1]} : vector<8x96xf32> to vector<8x32xf32>
    %24 = vector.extract_strided_slice %19 {offsets = [0, 64], sizes = [8, 32], strides = [1, 1]} : vector<8x96xf32> to vector<8x32xf32>
    %25 = arith.mulf %23, %10 : vector<8x32xf32>
    %26 = arith.mulf %22, %21 : vector<8x32xf32>
    %27 = arith.addf %25, %26 : vector<8x32xf32>
    %28 = math.tanh %27 : vector<8x32xf32>
    %29 = arith.mulf %24, %28 : vector<8x32xf32>
    %30 = vector.extract_strided_slice %7 {offsets = [8, 0], sizes = [8, 128], strides = [1, 1]} : vector<64x128xf32> to vector<8x128xf32>
    %cst_9 = arith.constant dense<0.000000e+00> : vector<8x128xf32>
    %31 = tpu.matmul %29, %8, %cst_9 {dimension_numbers = #tpu.dot_dimension_numbers<[1], [0], [0], [1], [0, 0, 1, 1], [], []>} : vector<8x32xf32>, vector<32x128xf32>, vector<8x128xf32> -> vector<8x128xf32>
    %32 = arith.addf %30, %31 : vector<8x128xf32>
    %33 = vector.extract_strided_slice %32 {offsets = [0, 0], sizes = [8, 96], strides = [1, 1]} : vector<8x128xf32> to vector<8x96xf32>
    %34 = arith.negf %33 : vector<8x96xf32>
    %35 = math.exp %34 : vector<8x96xf32>
    %cst_10 = arith.constant 1.000000e+00 : f32
    %36 = vector.broadcast %cst_10 : f32 to vector<8x96xf32>
    %37 = arith.addf %36, %35 : vector<8x96xf32>
    %38 = arith.divf %36, %37 : vector<8x96xf32>
    %39 = vector.extract_strided_slice %32 {offsets = [0, 96], sizes = [8, 32], strides = [1, 1]} : vector<8x128xf32> to vector<8x32xf32>
    %40 = math.tanh %39 : vector<8x32xf32>
    %41 = vector.extract_strided_slice %38 {offsets = [0, 0], sizes = [8, 32], strides = [1, 1]} : vector<8x96xf32> to vector<8x32xf32>
    %42 = vector.extract_strided_slice %38 {offsets = [0, 32], sizes = [8, 32], strides = [1, 1]} : vector<8x96xf32> to vector<8x32xf32>
    %43 = vector.extract_strided_slice %38 {offsets = [0, 64], sizes = [8, 32], strides = [1, 1]} : vector<8x96xf32> to vector<8x32xf32>
    %44 = arith.mulf %42, %27 : vector<8x32xf32>
    %45 = arith.mulf %41, %40 : vector<8x32xf32>
    %46 = arith.addf %44, %45 : vector<8x32xf32>
    %47 = math.tanh %46 : vector<8x32xf32>
    %48 = arith.mulf %43, %47 : vector<8x32xf32>
    %49 = vector.extract_strided_slice %7 {offsets = [16, 0], sizes = [8, 128], strides = [1, 1]} : vector<64x128xf32> to vector<8x128xf32>
    %cst_11 = arith.constant dense<0.000000e+00> : vector<8x128xf32>
    %50 = tpu.matmul %48, %8, %cst_11 {dimension_numbers = #tpu.dot_dimension_numbers<[1], [0], [0], [1], [0, 0, 1, 1], [], []>} : vector<8x32xf32>, vector<32x128xf32>, vector<8x128xf32> -> vector<8x128xf32>
    %51 = arith.addf %49, %50 : vector<8x128xf32>
    %52 = vector.extract_strided_slice %51 {offsets = [0, 0], sizes = [8, 96], strides = [1, 1]} : vector<8x128xf32> to vector<8x96xf32>
    %53 = arith.negf %52 : vector<8x96xf32>
    %54 = math.exp %53 : vector<8x96xf32>
    %cst_12 = arith.constant 1.000000e+00 : f32
    %55 = vector.broadcast %cst_12 : f32 to vector<8x96xf32>
    %56 = arith.addf %55, %54 : vector<8x96xf32>
    %57 = arith.divf %55, %56 : vector<8x96xf32>
    %58 = vector.extract_strided_slice %51 {offsets = [0, 96], sizes = [8, 32], strides = [1, 1]} : vector<8x128xf32> to vector<8x32xf32>
    %59 = math.tanh %58 : vector<8x32xf32>
    %60 = vector.extract_strided_slice %57 {offsets = [0, 0], sizes = [8, 32], strides = [1, 1]} : vector<8x96xf32> to vector<8x32xf32>
    %61 = vector.extract_strided_slice %57 {offsets = [0, 32], sizes = [8, 32], strides = [1, 1]} : vector<8x96xf32> to vector<8x32xf32>
    %62 = vector.extract_strided_slice %57 {offsets = [0, 64], sizes = [8, 32], strides = [1, 1]} : vector<8x96xf32> to vector<8x32xf32>
    %63 = arith.mulf %61, %46 : vector<8x32xf32>
    %64 = arith.mulf %60, %59 : vector<8x32xf32>
    %65 = arith.addf %63, %64 : vector<8x32xf32>
    %66 = math.tanh %65 : vector<8x32xf32>
    %67 = arith.mulf %62, %66 : vector<8x32xf32>
    %68 = vector.extract_strided_slice %7 {offsets = [24, 0], sizes = [8, 128], strides = [1, 1]} : vector<64x128xf32> to vector<8x128xf32>
    %cst_13 = arith.constant dense<0.000000e+00> : vector<8x128xf32>
    %69 = tpu.matmul %67, %8, %cst_13 {dimension_numbers = #tpu.dot_dimension_numbers<[1], [0], [0], [1], [0, 0, 1, 1], [], []>} : vector<8x32xf32>, vector<32x128xf32>, vector<8x128xf32> -> vector<8x128xf32>
    %70 = arith.addf %68, %69 : vector<8x128xf32>
    %71 = vector.extract_strided_slice %70 {offsets = [0, 0], sizes = [8, 96], strides = [1, 1]} : vector<8x128xf32> to vector<8x96xf32>
    %72 = arith.negf %71 : vector<8x96xf32>
    %73 = math.exp %72 : vector<8x96xf32>
    %cst_14 = arith.constant 1.000000e+00 : f32
    %74 = vector.broadcast %cst_14 : f32 to vector<8x96xf32>
    %75 = arith.addf %74, %73 : vector<8x96xf32>
    %76 = arith.divf %74, %75 : vector<8x96xf32>
    %77 = vector.extract_strided_slice %70 {offsets = [0, 96], sizes = [8, 32], strides = [1, 1]} : vector<8x128xf32> to vector<8x32xf32>
    %78 = math.tanh %77 : vector<8x32xf32>
    %79 = vector.extract_strided_slice %76 {offsets = [0, 0], sizes = [8, 32], strides = [1, 1]} : vector<8x96xf32> to vector<8x32xf32>
    %80 = vector.extract_strided_slice %76 {offsets = [0, 32], sizes = [8, 32], strides = [1, 1]} : vector<8x96xf32> to vector<8x32xf32>
    %81 = vector.extract_strided_slice %76 {offsets = [0, 64], sizes = [8, 32], strides = [1, 1]} : vector<8x96xf32> to vector<8x32xf32>
    %82 = arith.mulf %80, %65 : vector<8x32xf32>
    %83 = arith.mulf %79, %78 : vector<8x32xf32>
    %84 = arith.addf %82, %83 : vector<8x32xf32>
    %85 = math.tanh %84 : vector<8x32xf32>
    %86 = arith.mulf %81, %85 : vector<8x32xf32>
    %87 = vector.extract_strided_slice %7 {offsets = [32, 0], sizes = [8, 128], strides = [1, 1]} : vector<64x128xf32> to vector<8x128xf32>
    %cst_15 = arith.constant dense<0.000000e+00> : vector<8x128xf32>
    %88 = tpu.matmul %86, %8, %cst_15 {dimension_numbers = #tpu.dot_dimension_numbers<[1], [0], [0], [1], [0, 0, 1, 1], [], []>} : vector<8x32xf32>, vector<32x128xf32>, vector<8x128xf32> -> vector<8x128xf32>
    %89 = arith.addf %87, %88 : vector<8x128xf32>
    %90 = vector.extract_strided_slice %89 {offsets = [0, 0], sizes = [8, 96], strides = [1, 1]} : vector<8x128xf32> to vector<8x96xf32>
    %91 = arith.negf %90 : vector<8x96xf32>
    %92 = math.exp %91 : vector<8x96xf32>
    %cst_16 = arith.constant 1.000000e+00 : f32
    %93 = vector.broadcast %cst_16 : f32 to vector<8x96xf32>
    %94 = arith.addf %93, %92 : vector<8x96xf32>
    %95 = arith.divf %93, %94 : vector<8x96xf32>
    %96 = vector.extract_strided_slice %89 {offsets = [0, 96], sizes = [8, 32], strides = [1, 1]} : vector<8x128xf32> to vector<8x32xf32>
    %97 = math.tanh %96 : vector<8x32xf32>
    %98 = vector.extract_strided_slice %95 {offsets = [0, 0], sizes = [8, 32], strides = [1, 1]} : vector<8x96xf32> to vector<8x32xf32>
    %99 = vector.extract_strided_slice %95 {offsets = [0, 32], sizes = [8, 32], strides = [1, 1]} : vector<8x96xf32> to vector<8x32xf32>
    %100 = vector.extract_strided_slice %95 {offsets = [0, 64], sizes = [8, 32], strides = [1, 1]} : vector<8x96xf32> to vector<8x32xf32>
    %101 = arith.mulf %99, %84 : vector<8x32xf32>
    %102 = arith.mulf %98, %97 : vector<8x32xf32>
    %103 = arith.addf %101, %102 : vector<8x32xf32>
    %104 = math.tanh %103 : vector<8x32xf32>
    %105 = arith.mulf %100, %104 : vector<8x32xf32>
    %106 = vector.extract_strided_slice %7 {offsets = [40, 0], sizes = [8, 128], strides = [1, 1]} : vector<64x128xf32> to vector<8x128xf32>
    %cst_17 = arith.constant dense<0.000000e+00> : vector<8x128xf32>
    %107 = tpu.matmul %105, %8, %cst_17 {dimension_numbers = #tpu.dot_dimension_numbers<[1], [0], [0], [1], [0, 0, 1, 1], [], []>} : vector<8x32xf32>, vector<32x128xf32>, vector<8x128xf32> -> vector<8x128xf32>
    %108 = arith.addf %106, %107 : vector<8x128xf32>
    %109 = vector.extract_strided_slice %108 {offsets = [0, 0], sizes = [8, 96], strides = [1, 1]} : vector<8x128xf32> to vector<8x96xf32>
    %110 = arith.negf %109 : vector<8x96xf32>
    %111 = math.exp %110 : vector<8x96xf32>
    %cst_18 = arith.constant 1.000000e+00 : f32
    %112 = vector.broadcast %cst_18 : f32 to vector<8x96xf32>
    %113 = arith.addf %112, %111 : vector<8x96xf32>
    %114 = arith.divf %112, %113 : vector<8x96xf32>
    %115 = vector.extract_strided_slice %108 {offsets = [0, 96], sizes = [8, 32], strides = [1, 1]} : vector<8x128xf32> to vector<8x32xf32>
    %116 = math.tanh %115 : vector<8x32xf32>
    %117 = vector.extract_strided_slice %114 {offsets = [0, 0], sizes = [8, 32], strides = [1, 1]} : vector<8x96xf32> to vector<8x32xf32>
    %118 = vector.extract_strided_slice %114 {offsets = [0, 32], sizes = [8, 32], strides = [1, 1]} : vector<8x96xf32> to vector<8x32xf32>
    %119 = vector.extract_strided_slice %114 {offsets = [0, 64], sizes = [8, 32], strides = [1, 1]} : vector<8x96xf32> to vector<8x32xf32>
    %120 = arith.mulf %118, %103 : vector<8x32xf32>
    %121 = arith.mulf %117, %116 : vector<8x32xf32>
    %122 = arith.addf %120, %121 : vector<8x32xf32>
    %123 = math.tanh %122 : vector<8x32xf32>
    %124 = arith.mulf %119, %123 : vector<8x32xf32>
    %125 = vector.extract_strided_slice %7 {offsets = [48, 0], sizes = [8, 128], strides = [1, 1]} : vector<64x128xf32> to vector<8x128xf32>
    %cst_19 = arith.constant dense<0.000000e+00> : vector<8x128xf32>
    %126 = tpu.matmul %124, %8, %cst_19 {dimension_numbers = #tpu.dot_dimension_numbers<[1], [0], [0], [1], [0, 0, 1, 1], [], []>} : vector<8x32xf32>, vector<32x128xf32>, vector<8x128xf32> -> vector<8x128xf32>
    %127 = arith.addf %125, %126 : vector<8x128xf32>
    %128 = vector.extract_strided_slice %127 {offsets = [0, 0], sizes = [8, 96], strides = [1, 1]} : vector<8x128xf32> to vector<8x96xf32>
    %129 = arith.negf %128 : vector<8x96xf32>
    %130 = math.exp %129 : vector<8x96xf32>
    %cst_20 = arith.constant 1.000000e+00 : f32
    %131 = vector.broadcast %cst_20 : f32 to vector<8x96xf32>
    %132 = arith.addf %131, %130 : vector<8x96xf32>
    %133 = arith.divf %131, %132 : vector<8x96xf32>
    %134 = vector.extract_strided_slice %127 {offsets = [0, 96], sizes = [8, 32], strides = [1, 1]} : vector<8x128xf32> to vector<8x32xf32>
    %135 = math.tanh %134 : vector<8x32xf32>
    %136 = vector.extract_strided_slice %133 {offsets = [0, 0], sizes = [8, 32], strides = [1, 1]} : vector<8x96xf32> to vector<8x32xf32>
    %137 = vector.extract_strided_slice %133 {offsets = [0, 32], sizes = [8, 32], strides = [1, 1]} : vector<8x96xf32> to vector<8x32xf32>
    %138 = vector.extract_strided_slice %133 {offsets = [0, 64], sizes = [8, 32], strides = [1, 1]} : vector<8x96xf32> to vector<8x32xf32>
    %139 = arith.mulf %137, %122 : vector<8x32xf32>
    %140 = arith.mulf %136, %135 : vector<8x32xf32>
    %141 = arith.addf %139, %140 : vector<8x32xf32>
    %142 = math.tanh %141 : vector<8x32xf32>
    %143 = arith.mulf %138, %142 : vector<8x32xf32>
    %144 = vector.extract_strided_slice %7 {offsets = [56, 0], sizes = [8, 128], strides = [1, 1]} : vector<64x128xf32> to vector<8x128xf32>
    %cst_21 = arith.constant dense<0.000000e+00> : vector<8x128xf32>
    %145 = tpu.matmul %143, %8, %cst_21 {dimension_numbers = #tpu.dot_dimension_numbers<[1], [0], [0], [1], [0, 0, 1, 1], [], []>} : vector<8x32xf32>, vector<32x128xf32>, vector<8x128xf32> -> vector<8x128xf32>
    %146 = arith.addf %144, %145 : vector<8x128xf32>
    %147 = vector.extract_strided_slice %146 {offsets = [0, 0], sizes = [8, 96], strides = [1, 1]} : vector<8x128xf32> to vector<8x96xf32>
    %148 = arith.negf %147 : vector<8x96xf32>
    %149 = math.exp %148 : vector<8x96xf32>
    %cst_22 = arith.constant 1.000000e+00 : f32
    %150 = vector.broadcast %cst_22 : f32 to vector<8x96xf32>
    %151 = arith.addf %150, %149 : vector<8x96xf32>
    %152 = arith.divf %150, %151 : vector<8x96xf32>
    %153 = vector.extract_strided_slice %146 {offsets = [0, 96], sizes = [8, 32], strides = [1, 1]} : vector<8x128xf32> to vector<8x32xf32>
    %154 = math.tanh %153 : vector<8x32xf32>
    %155 = vector.extract_strided_slice %152 {offsets = [0, 0], sizes = [8, 32], strides = [1, 1]} : vector<8x96xf32> to vector<8x32xf32>
    %156 = vector.extract_strided_slice %152 {offsets = [0, 32], sizes = [8, 32], strides = [1, 1]} : vector<8x96xf32> to vector<8x32xf32>
    %157 = vector.extract_strided_slice %152 {offsets = [0, 64], sizes = [8, 32], strides = [1, 1]} : vector<8x96xf32> to vector<8x32xf32>
    %158 = arith.mulf %156, %141 : vector<8x32xf32>
    %159 = arith.mulf %155, %154 : vector<8x32xf32>
    %160 = arith.addf %158, %159 : vector<8x32xf32>
    %161 = math.tanh %160 : vector<8x32xf32>
    %162 = arith.mulf %157, %161 : vector<8x32xf32>
    %163 = tpu.concatenate %29, %48, %67, %86, %105, %124, %143, %162, %160 in 1 : vector<8x32xf32>, vector<8x32xf32>, vector<8x32xf32>, vector<8x32xf32>, vector<8x32xf32>, vector<8x32xf32>, vector<8x32xf32>, vector<8x32xf32>, vector<8x32xf32> -> vector<8x288xf32>
    %c0_23 = arith.constant 0 : index
    %c0_24 = arith.constant 0 : index
    %164 = vector.load %arg3[%c0_23, %c0_24] : memref<8x288xf32, #tpu.memory_space<vmem>>, vector<8x288xf32>
    tpu.vector_store %arg3[%c0_23, %c0_24], %163 {strides = array<i32>} : memref<8x288xf32, #tpu.memory_space<vmem>>, vector<8x288xf32>,
    return
  }
}

</mosaic_0001>

<bundles_post_ra>
// kernel: encoder_forward.1
= control target key start
LH: loop header
LB: loop body
LE: loop exit
PB: predicated region body
PF: predicated region fallthrough
CT: control target
= control target key end

     0   :  { %8 = vsyncpa [#allocation3], 0  ;;  %s1453_s12 = smov [#allocation2]   ;;  %s1679_s0 = inlined_call_operand.vmem [shape: s32[64,1], index: 0, kind: input, shape index: {}]   ;;  %s1680_s1 = inlined_call_operand.hbm [shape: f32[128,128], index: 1, kind: input, shape index: {}]   ;;  %s1681_s2 = inlined_call_operand.vmem [shape: f32[32,128], index: 2, kind: input, shape index: {}]   ;;  %s1682_s3 = inlined_call_operand.vmem [shape: f32[8,288], index: 3, kind: output, shape index: {}]  }
   0x1   :  { %s16_s13 = sshll.u32 %s1453_s12, 4  ;;  %s1429_s16 = scalar_lea.hbm %s1680_s1, 2048  ;;  %s17_s13 = int_to_ptr.vmem [resolvable:$true] %s16_s13 }
   0x2   :  { %p1430_p0 = scmp.ne.s32.totalorder %s1680_s1, %s1429_s16  ;;  %p1433_p1 = scmp.lt.u32.totalorder %s1429_s16, %s1680_s1 }
   0x4   :  { %p1435_p2 = pnand %p1433_p1, %p1430_p0 }
   0x6   :  { %1438 = shalt.err (!%p1435_p2)
}
   0x7   :  { %s1439_s21 = scalar_lea.vmem %s17_s13, 2048  ;;  %p1444_p4 = scmp.lt.s32.totalorder %s17_s13, %s17_s13 }
   0x8   :  { %p1440_p3 = scmp.ne.s32.totalorder %s17_s13, %s1439_s21  ;;  %p1445_p5 = scmp.lt.s32.totalorder %s1439_s21, %s1439_s21 }
   0xa   :  { %p1446_p6 = por %p1445_p5, %p1444_p4 }
   0xc   :  { %p1447_p7 = pnand %p1446_p6, %p1440_p3 }
   0xe   :  { %1450 = shalt.err (!%p1447_p7)
}
   0xf   :  { %s1454_s22 = smov 128   ;;  %s1455_s23 = smov 8  }
  0x10   :  { %22 = dma.hbm_to_vmem [thread:$0]  %s1680_s1, 2048, %s17_s13, [#allocation3], %s1454_s22, %s1454_s22, %s1455_s23  }
  0x11   :  { %1451 = dma.done.wait [#allocation3], 2048  }
  0x12   :  { %1452 = vsyncadd [#allocation3], 4294965248  ;;  %v1456_v0 = vmov 0   ;;  %v1457_v1 = vmov 0.0|0.0   ;;  %v28_v2 = vld [vmem:[%s1679_s0] sm:$0xff]  ;;  %v87_v4 = vld [vmem:[#allocation2 + $0x8] sm:$0xff]  ;;  %v36_v35 = vlaneseq }
  0x13   :  { %1363 = vset.pattern.permute.xlu0 %v1456_v0  ;;  %1304 = vmatprep.subr.bf16.mxu1 %v1457_v1  ;;  %v86_v3 = vld [vmem:[#allocation2] sm:$0xff]  ;;  %v88_v5 = vld [vmem:[#allocation2 + $0x10] sm:$0xff]  ;;  %v89_v6 = vld [vmem:[#allocation2 + $0x18] sm:$0xff]  ;;  %vm1458_vm0 = vmmov 0   ;;  %v1459_v17 = vmov 0.0   ;;  %v1460_v38 = vmov 1.0  }
  0x14   :  { %1364 = vset.pattern.permute.xlu1 %v1456_v0  ;;  %39 = vperm.xlu0 %1363, %v28_v2   ;;  %v29_v7 = vld [vmem:[%s1679_s0 + $0x8] sm:$0xff]  ;;  %v1272_v8 = vpack.c.bf16 %v87_v4, %v86_v3  ;;  %v1276_v9 = vpack.c.bf16 %v89_v6, %v88_v5  ;;  %v90_v10 = vld [vmem:[#allocation2 + $0x20] sm:$0xff]  ;;  %v209_v16 = vld [vmem:[%s1681_s2 + $0x10] sm:$0xff]  ;;  %v1533_v36 = vand.u32 127, %v36_v35  ;;  %s1462_s10 = smov 64   ;;  %vm211_vm3 = vcmask 261120  }
  0x15   :  { %v91_v11 = vld [vmem:[#allocation2 + $0x28] sm:$0xff]  ;;  %v207_v12 = vld [vmem:[%s1681_s2] sm:$0xff]  ;;  %1192 = vmatprep.mubr.msk.f32.mxu1 %vm1458_vm0, %v1459_v17  ;;  %v92_v18 = vld [vmem:[#allocation2 + $0x30] sm:$0xff]  ;;  %vm1030_vm10 = vcmask 523264   ;;  %vm1032_vm11 = vcmask 785408  }
  0x16   :  { %1273 = vmatprep.subr.bf16.mxu0 %v1272_v8  ;;  %v208_v13 = vld [vmem:[%s1681_s2 + $0x8] sm:$0xff]  ;;  %v1280_v14 = vpack.c.bf16 %v91_v11, %v90_v10  ;;  %v93_v19 = vld [vmem:[#allocation2 + $0x38] sm:$0xff]  ;;  %v94_v23 = vld [vmem:[#allocation2 + $0x40] sm:$0xff] }
  0x17   :  { %1275 = vmatpush3.bf16.msra.mxu0 %v1272_v8  ;;  %v1509_v15 = vpack.c.bf16 %v208_v13, %v207_v12  ;;  %v210_v20 = vld [vmem:[%s1681_s2 + $0x18] sm:$0xff]  ;;  %v1284_v22 = vpack.c.bf16 %v93_v19, %v92_v18  ;;  %v95_v24 = vld [vmem:[#allocation2 + $0x48] sm:$0xff]  ;;  %v96_v26 = vld [vmem:[#allocation2 + $0x50] sm:$0xff]  ;;  %s1461_s2 = smov 32  }
  0x18   :  { %42 = vperm.xlu0 %1363, %v29_v7   ;;  %1277 = vmatprep.subr.bf16.mxu0 %v1276_v9  ;;  %v1520_v21 = vpack.c.bf16 %v210_v20, %v209_v16  ;;  %v1288_v25 = vpack.c.bf16 %v95_v24, %v94_v23  ;;  %v97_v27 = vld [vmem:[#allocation2 + $0x58] sm:$0xff]  ;;  %v98_v29 = vld [vmem:[#allocation2 + $0x60] sm:$0xff]  ;;  %v99_v30 = vld [vmem:[#allocation2 + $0x68] sm:$0xff] }
  0x19   :  { %1306 = vmatpush3.bf16.msra.mxu1 %v1509_v15  ;;  %v1292_v28 = vpack.c.bf16 %v97_v27, %v96_v26  ;;  %v1296_v31 = vpack.c.bf16 %v99_v30, %v98_v29  ;;  %v100_v32 = vld [vmem:[#allocation2 + $0x70] sm:$0xff]  ;;  %v101_v33 = vld [vmem:[#allocation2 + $0x78] sm:$0xff] }
  0x1a   :  { %1307 = vmatprep.subr.bf16.mxu1 %v1457_v1  ;;  %v1300_v34 = vpack.c.bf16 %v101_v33, %v100_v32  ;;  %v30_v6 = vld [vmem:[%s1679_s0 + $0x10] sm:$0xff]  ;;  %v31_v11 = vld [vmem:[%s1679_s0 + $0x18] sm:$0xff] }
  0x1b   :  { %1279 = vmatpush3.bf16.msra.mxu0 %v1276_v9 }
  0x1c   :  { %1281 = vmatprep.subr.bf16.mxu0 %v1280_v14 }
  0x1d   :  { %1309 = vmatpush3.bf16.msra.mxu1 %v1520_v21 }
  0x1e   :  { %1310 = vmatprep.subr.bf16.mxu1 %v1457_v1 }
  0x1f   :  { %1283 = vmatpush3.bf16.msra.mxu0 %v1280_v14 }
  0x20   :  { %1285 = vmatprep.subr.bf16.mxu0 %v1284_v22  ;;  %1193 = vmatmul.mubr.f32.vlgmr.msra.gmra.mrb[0].mxu1 %v1459_v17 }
  0x21   :  { %1312 = vmatpush3.bf16.msra.mxu1 %v1509_v15  ;;  %1203 = vmatprep.mubr.msk.f32.mxu1 %vm1458_vm0, %v1459_v17 }
  0x22   :  { %1313 = vmatprep.subr.bf16.mxu1 %v1457_v1 }
  0x23   :  { %1287 = vmatpush3.bf16.msra.mxu0 %v1284_v22 }
  0x24   :  { %1289 = vmatprep.subr.bf16.mxu0 %v1288_v25 }
  0x25   :  { %1315 = vmatpush3.bf16.msra.mxu1 %v1520_v21 }
  0x26   :  { %1316 = vmatprep.subr.bf16.mxu1 %v1457_v1 }
  0x27   :  { %1291 = vmatpush3.bf16.msra.mxu0 %v1288_v25 }
  0x28   :  { %1293 = vmatprep.subr.bf16.mxu0 %v1292_v28 }
  0x2b   :  { %1295 = vmatpush3.bf16.msra.mxu0 %v1292_v28 }
  0x2c   :  { %1297 = vmatprep.subr.bf16.mxu0 %v1296_v31 }
  0x2f   :  { %1299 = vmatpush3.bf16.msra.mxu0 %v1296_v31 }
  0x30   :  { %1301 = vmatprep.subr.bf16.mxu0 %v1300_v34 }
  0x33   :  { %1303 = vmatpush3.bf16.msra.mxu0 %v1300_v34 }
  0x34   :  { %1334 = vmatprep.subr.bf16.mxu0 %v1457_v1 }
  0x93   :  { %v40_v37 = vpop.permute.xlu0 %39 }
  0x94   :  { %vm62_vm1 = vcmp.eq.s32.totalorder %v40_v37, %v1533_v36 }
  0x95   :  { %1172 = vmatprep.mubr.msk.f32.mxu0 %vm62_vm1, %v1460_v38 }
  0x97   :  { %v43_v39 = vpop.permute.xlu0 %42 }
  0x98   :  { %vm63_vm2 = vcmp.eq.s32.totalorder %v43_v39, %v1533_v36 }
  0x99   :  { %1173 = vmatmul.mubr.msk.f32.vlgmr.msra.gmra.mrb[0].mxu0 %vm63_vm2, %v1460_v38 }
  0x9a   :  { %1336 = vmatpush3.bf16.msra.mxu0 %v1509_v15 }
  0x9b   :  { %1337 = vmatprep.subr.bf16.mxu0 %v1457_v1 }
  0x9e   :  { %1339 = vmatpush3.bf16.msra.mxu0 %v1520_v21 }
  0x9f   :  { %1346 = vmatprep.subr.bf16.mxu0 %v1457_v1 }
  0xf3   :  { %v281_v40 = vpop.f32.mrb[0].mxu1 }
  0xf4   :  { %v1194_v41 = vpop.f32.mrb[1].mxu1 }
 0x16c   :  { %v1174_v42 = vpop.f32.mrb[0].mxu0 }
 0x16d   :  { %v168_v43 = vpop.f32.mrb[1].mxu0 }
 0x16e   :  { %v285_v44 = vadd.f32 %v281_v40, %v168_v43 }
 0x170   :  { %1365 = vtanh.f32 %v285_v44  ;;  %v1061_v46 = vmul.f32 -1.442695, %v285_v44 }
 0x172   :  { %1367 = vpow2.f32 %v1061_v46 }
 0x17a   :  { %v1366_v45 = vpop.eup %1365 }
 0x17b   :  { %295 = vrot.lane.b32.xlu1 %v1366_v45, %s1461_s2 }
 0x17c   :  { %v1368_v47 = vpop.eup %1367 }
 0x17d   :  { %v289_v48 = vadd.f32 1.0, %v1368_v47 }
 0x17f   :  { %1369 = vrcp.f32 %v289_v48 }
 0x189   :  { %v1370_v49 = vpop.eup %1369 }
 0x18a   :  { %v293_v52 = vmul.f32 0.0, %v1370_v49 }
 0x1ed   :  { %v296_v50 = vpop.permute.xlu1 %295 }
 0x1ee   :  { %v298_v51 = vmul.f32 %v1370_v49, %v296_v50 }
 0x1f0   :  { %300 = vrot.lane.b32.xlu1 %v298_v51, %s1461_s2  ;;  %v32_v51 = vld [vmem:[%s1679_s0 + $0x20] sm:$0xff] }
 0x262   :  { %v301_v53 = vpop.permute.xlu1 %300 }
 0x263   :  { %v303_v54 = vadd.f32 %v301_v53, %v293_v52 }
 0x265   :  { %1371 = vtanh.f32 %v303_v54 }
 0x26f   :  { %v1372_v55 = vpop.eup %1371 }
 0x270   :  { %306 = vrot.lane.b32.xlu0 %v1372_v55, %s1461_s2 }
 0x2e2   :  { %v307_v56 = vpop.permute.xlu0 %306 }
 0x2e3   :  { %v309_v57 = vmul.f32 %v1370_v49, %v307_v56  ;;  %v33_v56 = vld [vmem:[%s1679_s0 + $0x28] sm:$0xff] }
 0x2e5   :  { %311 = vrot.lane.b32.xlu1 %v309_v57, %s1462_s10 }
 0x357   :  { %v1547_v58 = vpop.permute.xlu1 %311 }
 0x358   :  { %1204 = vmatmul.mubr.msk.f32.vlgmr.msra.gmra.mrb[2].mxu1 %vm211_vm3, %v1547_v58 }
 0x359   :  { %1318 = vmatpush3.bf16.msra.mxu1 %v1509_v15  ;;  %1214 = vmatprep.mubr.msk.f32.mxu1 %vm1458_vm0, %v1459_v17 }
 0x35a   :  { %1319 = vmatprep.subr.bf16.mxu1 %v1457_v1 }
 0x35d   :  { %1321 = vmatpush3.bf16.msra.mxu1 %v1520_v21 }
 0x35e   :  { %1322 = vmatprep.subr.bf16.mxu1 %v1457_v1 }
 0x42b   :  { %v381_v59 = vpop.f32.mrb[2].mxu1 }
 0x42c   :  { %v385_v60 = vadd.f32 %v1174_v42, %v381_v59  ;;  %v1205_v61 = vpop.f32.mrb[3].mxu1 }
 0x42e   :  { %1373 = vtanh.f32 %v385_v60  ;;  %v1063_v63 = vmul.f32 -1.442695, %v385_v60 }
 0x430   :  { %1375 = vpow2.f32 %v1063_v63 }
 0x438   :  { %v1374_v62 = vpop.eup %1373 }
 0x439   :  { %395 = vrot.lane.b32.xlu0 %v1374_v62, %s1461_s2 }
 0x43a   :  { %v1376_v0 = vpop.eup %1375 }
 0x43b   :  { %v389_v2 = vadd.f32 1.0, %v1376_v0 }
 0x43d   :  { %1377 = vrcp.f32 %v389_v2 }
 0x447   :  { %v1378_v3 = vpop.eup %1377 }
 0x448   :  { %v393_v7 = vmul.f32 %v1378_v3, %v303_v54 }
 0x4ab   :  { %v396_v4 = vpop.permute.xlu0 %395 }
 0x4ac   :  { %v398_v5 = vmul.f32 %v1378_v3, %v396_v4 }
 0x4ae   :  { %400 = vrot.lane.b32.xlu1 %v398_v5, %s1461_s2 }
 0x4b2   :  { %45 = vperm.xlu1 %1364, %v30_v6  }
 0x520   :  { %v401_v8 = vpop.permute.xlu1 %400 }
 0x521   :  { %v403_v9 = vadd.f32 %v401_v8, %v393_v7 }
 0x523   :  { %1379 = vtanh.f32 %v403_v9 }
 0x52d   :  { %v1380_v10 = vpop.eup %1379 }
 0x52e   :  { %406 = vrot.lane.b32.xlu0 %v1380_v10, %s1461_s2 }
 0x531   :  { %v46_v12 = vpop.permute.xlu1 %45 }
 0x532   :  { %48 = vperm.xlu0 %1363, %v31_v11   ;;  %vm64_vm4 = vcmp.eq.s32.totalorder %v46_v12, %v1533_v36  ;;  %v34_v12 = vld [vmem:[%s1679_s0 + $0x30] sm:$0xff] }
 0x533   :  { %1175 = vmatprep.mubr.msk.f32.mxu0 %vm64_vm4, %v1460_v38 }
 0x5a0   :  { %v407_v13 = vpop.permute.xlu0 %406 }
 0x5a1   :  { %v1568_v14 = vmul.f32 %v1378_v3, %v407_v13 }
 0x5a3   :  { %411 = vrot.lane.b32.xlu1 %v1568_v14, %s1462_s10 }
 0x5b1   :  { %v49_v16 = vpop.permute.xlu0 %48 }
 0x5b2   :  { %vm65_vm5 = vcmp.eq.s32.totalorder %v49_v16, %v1533_v36 }
 0x5b3   :  { %1176 = vmatmul.mubr.msk.f32.gmra.mrb[2].mxu0 %vm65_vm5, %v1460_v38 }
 0x615   :  { %v412_v18 = vpop.permute.xlu1 %411 }
 0x616   :  { %1215 = vmatmul.mubr.msk.f32.vlgmr.msra.gmra.mrb[4].mxu1 %vm211_vm3, %v412_v18 }
 0x617   :  { %1324 = vmatpush3.bf16.msra.mxu1 %v1509_v15  ;;  %1225 = vmatprep.mubr.msk.f32.mxu1 %vm1458_vm0, %v1459_v17 }
 0x618   :  { %1325 = vmatprep.subr.bf16.mxu1 %v1457_v1 }
 0x61b   :  { %1327 = vmatpush3.bf16.msra.mxu1 %v1520_v21 }
 0x61c   :  { %1328 = vmatprep.subr.bf16.mxu1 %v1457_v1 }
 0x686   :  { %v1177_v19 = vpop.f32.mrb[2].mxu0 }
 0x687   :  { %v178_v20 = vpop.f32.mrb[3].mxu0 }
 0x6e9   :  { %v481_v22 = vpop.f32.mrb[4].mxu1 }
 0x6ea   :  { %v485_v23 = vadd.f32 %v481_v22, %v178_v20  ;;  %v1216_v24 = vpop.f32.mrb[5].mxu1  ;;  %v35_v20 = vld [vmem:[%s1679_s0 + $0x38] sm:$0xff]  ;;  %s1463_s0 = smov 96  }
 0x6ec   :  { %1381 = vtanh.f32 %v485_v23  ;;  %v1065_v26 = vmul.f32 -1.442695, %v485_v23 }
 0x6ee   :  { %1383 = vpow2.f32 %v1065_v26 }
 0x6f6   :  { %v1382_v25 = vpop.eup %1381 }
 0x6f7   :  { %495 = vrot.lane.b32.xlu0 %v1382_v25, %s1461_s2 }
 0x6f8   :  { %v1384_v27 = vpop.eup %1383 }
 0x6f9   :  { %v489_v28 = vadd.f32 1.0, %v1384_v27 }
 0x6fb   :  { %1385 = vrcp.f32 %v489_v28 }
 0x705   :  { %v1386_v29 = vpop.eup %1385 }
 0x706   :  { %v493_v32 = vmul.f32 %v1386_v29, %v403_v9 }
 0x769   :  { %v496_v30 = vpop.permute.xlu0 %495 }
 0x76a   :  { %v498_v31 = vmul.f32 %v1386_v29, %v496_v30 }
 0x76c   :  { %500 = vrot.lane.b32.xlu1 %v498_v31, %s1461_s2 }
 0x7de   :  { %v501_v33 = vpop.permute.xlu1 %500 }
 0x7df   :  { %v503_v34 = vadd.f32 %v501_v33, %v493_v32 }
 0x7e1   :  { %1387 = vtanh.f32 %v503_v34 }
 0x7eb   :  { %v1388_v35 = vpop.eup %1387 }
 0x7ec   :  { %506 = vrot.lane.b32.xlu0 %v1388_v35, %s1461_s2 }
 0x85e   :  { %v507_v37 = vpop.permute.xlu0 %506 }
 0x85f   :  { %v1584_v39 = vmul.f32 %v1386_v29, %v507_v37 }
 0x861   :  { %511 = vrot.lane.b32.xlu1 %v1584_v39, %s1462_s10 }
 0x8d3   :  { %v512_v40 = vpop.permute.xlu1 %511 }
 0x8d4   :  { %1226 = vmatmul.mubr.msk.f32.vlgmr.msra.gmra.mrb[6].mxu1 %vm211_vm3, %v512_v40 }
 0x8d5   :  { %1330 = vmatpush3.bf16.msra.mxu1 %v1509_v15  ;;  %1236 = vmatprep.mubr.msk.f32.mxu1 %vm1458_vm0, %v1459_v17 }
 0x8d6   :  { %1331 = vmatprep.subr.bf16.mxu1 %v1457_v1 }
 0x8d9   :  { %1333 = vmatpush3.bf16.msra.mxu1 %v1520_v21 }
 0x8da   :  { %1340 = vmatprep.subr.bf16.mxu1 %v1457_v1 }
 0x9a7   :  { %v581_v41 = vpop.f32.mrb[6].mxu1 }
 0x9a8   :  { %v585_v42 = vadd.f32 %v1177_v19, %v581_v41  ;;  %v1227_v43 = vpop.f32.mrb[7].mxu1 }
 0x9aa   :  { %1389 = vtanh.f32 %v585_v42  ;;  %v1067_v45 = vmul.f32 -1.442695, %v585_v42 }
 0x9ac   :  { %1391 = vpow2.f32 %v1067_v45 }
 0x9b4   :  { %v1390_v44 = vpop.eup %1389 }
 0x9b5   :  { %595 = vrot.lane.b32.xlu0 %v1390_v44, %s1461_s2 }
 0x9b6   :  { %v1392_v46 = vpop.eup %1391 }
 0x9b7   :  { %v589_v47 = vadd.f32 1.0, %v1392_v46 }
 0x9b9   :  { %1393 = vrcp.f32 %v589_v47 }
 0x9c3   :  { %v1394_v48 = vpop.eup %1393 }
 0x9c4   :  { %v593_v52 = vmul.f32 %v1394_v48, %v503_v34 }
 0xa27   :  { %v596_v49 = vpop.permute.xlu0 %595 }
 0xa28   :  { %v598_v50 = vmul.f32 %v1394_v48, %v596_v49 }
 0xa2a   :  { %600 = vrot.lane.b32.xlu1 %v598_v50, %s1461_s2 }
 0xa2e   :  { %51 = vperm.xlu1 %1364, %v32_v51  }
 0xa9c   :  { %v601_v53 = vpop.permute.xlu1 %600 }
 0xa9d   :  { %v603_v54 = vadd.f32 %v601_v53, %v593_v52 }
 0xa9f   :  { %1395 = vtanh.f32 %v603_v54 }
 0xaa9   :  { %v1396_v55 = vpop.eup %1395 }
 0xaaa   :  { %606 = vrot.lane.b32.xlu0 %v1396_v55, %s1461_s2 }
 0xaad   :  { %v52_v57 = vpop.permute.xlu1 %51 }
 0xaae   :  { %vm66_vm6 = vcmp.eq.s32.totalorder %v52_v57, %v1533_v36  ;;  %54 = vperm.xlu0 %1363, %v33_v56  }
 0xaaf   :  { %1178 = vmatprep.mubr.msk.f32.mxu0 %vm66_vm6, %v1460_v38 }
 0xb1c   :  { %v607_v59 = vpop.permute.xlu0 %606 }
 0xb1d   :  { %v1606_v60 = vmul.f32 %v1394_v48, %v607_v59 }
 0xb1f   :  { %611 = vrot.lane.b32.xlu1 %v1606_v60, %s1462_s10 }
 0xb2d   :  { %v55_v61 = vpop.permute.xlu0 %54 }
 0xb2e   :  { %vm67_vm7 = vcmp.eq.s32.totalorder %v55_v61, %v1533_v36 }
 0xb2f   :  { %1179 = vmatmul.mubr.msk.f32.gmra.mrb[4].mxu0 %vm67_vm7, %v1460_v38 }
 0xb91   :  { %v612_v62 = vpop.permute.xlu1 %611 }
 0xb92   :  { %1237 = vmatmul.mubr.msk.f32.vlgmr.msra.gmra.mrb[8].mxu1 %vm211_vm3, %v612_v62 }
 0xb93   :  { %1342 = vmatpush3.bf16.msra.mxu1 %v1509_v15  ;;  %1258 = vmatprep.mubr.msk.f32.mxu1 %vm1458_vm0, %v1459_v17 }
 0xb94   :  { %1343 = vmatprep.subr.bf16.mxu1 %v1457_v1 }
 0xb97   :  { %1345 = vmatpush3.bf16.msra.mxu1 %v1520_v21 }
 0xc02   :  { %v1180_v63 = vpop.f32.mrb[4].mxu0 }
 0xc03   :  { %v188_v0 = vpop.f32.mrb[5].mxu0 }
 0xc65   :  { %v681_v2 = vpop.f32.mrb[8].mxu1 }
 0xc66   :  { %v685_v3 = vadd.f32 %v681_v2, %v188_v0  ;;  %v1238_v4 = vpop.f32.mrb[9].mxu1 }
 0xc68   :  { %1397 = vtanh.f32 %v685_v3  ;;  %v1069_v6 = vmul.f32 -1.442695, %v685_v3 }
 0xc6a   :  { %1399 = vpow2.f32 %v1069_v6 }
 0xc72   :  { %v1398_v5 = vpop.eup %1397 }
 0xc73   :  { %695 = vrot.lane.b32.xlu0 %v1398_v5, %s1461_s2 }
 0xc74   :  { %v1400_v7 = vpop.eup %1399 }
 0xc75   :  { %v689_v8 = vadd.f32 1.0, %v1400_v7 }
 0xc77   :  { %1401 = vrcp.f32 %v689_v8 }
 0xc81   :  { %v1402_v9 = vpop.eup %1401 }
 0xc82   :  { %v693_v13 = vmul.f32 %v1402_v9, %v603_v54 }
 0xce5   :  { %v696_v10 = vpop.permute.xlu0 %695 }
 0xce6   :  { %v698_v11 = vmul.f32 %v1402_v9, %v696_v10 }
 0xce8   :  { %700 = vrot.lane.b32.xlu1 %v698_v11, %s1461_s2 }
 0xcec   :  { %57 = vperm.xlu1 %1364, %v34_v12  }
 0xd5a   :  { %v701_v16 = vpop.permute.xlu1 %700 }
 0xd5b   :  { %v703_v18 = vadd.f32 %v701_v16, %v693_v13 }
 0xd5d   :  { %1403 = vtanh.f32 %v703_v18 }
 0xd67   :  { %v1404_v19 = vpop.eup %1403 }
 0xd68   :  { %706 = vrot.lane.b32.xlu0 %v1404_v19, %s1461_s2 }
 0xd6b   :  { %v58_v22 = vpop.permute.xlu1 %57 }
 0xd6c   :  { %vm68_vm8 = vcmp.eq.s32.totalorder %v58_v22, %v1533_v36  ;;  %60 = vperm.xlu0 %1363, %v35_v20  }
 0xd6d   :  { %1181 = vmatprep.mubr.msk.f32.mxu0 %vm68_vm8, %v1460_v38 }
 0xdda   :  { %v707_v23 = vpop.permute.xlu0 %706 }
 0xddb   :  { %v709_v24 = vmul.f32 %v1402_v9, %v707_v23 }
 0xddd   :  { %711 = vrot.lane.b32.xlu1 %v709_v24, %s1462_s10 }
 0xdeb   :  { %v61_v25 = vpop.permute.xlu0 %60 }
 0xdec   :  { %vm69_vm9 = vcmp.eq.s32.totalorder %v61_v25, %v1533_v36 }
 0xded   :  { %1182 = vmatmul.mubr.msk.f32.gmra.mrb[6].mxu0 %vm69_vm9, %v1460_v38 }
 0xdee   :  { %1247 = vmatprep.mubr.msk.f32.mxu0 %vm1458_vm0, %v1459_v17 }
 0xe4f   :  { %v1634_v26 = vpop.permute.xlu1 %711 }
 0xe50   :  { %1248 = vmatmul.mubr.msk.f32.vlgmr.msra.gmra.mrb[8].mxu0 %vm211_vm3, %v1634_v26 }
 0xe51   :  { %1348 = vmatpush3.bf16.msra.mxu0 %v1509_v15  ;;  %1269 = vmatprep.mubr.msk.f32.mxu0 %vm1458_vm0, %v1459_v17 }
 0xe52   :  { %1349 = vmatprep.subr.bf16.mxu0 %v1457_v1 }
 0xe55   :  { %1351 = vmatpush3.bf16.msra.mxu0 %v1520_v21 }
 0xec0   :  { %v1183_v36 = vpop.f32.mrb[6].mxu0 }
 0xec1   :  { %v198_v27 = vpop.f32.mrb[7].mxu0 }
 0xf23   :  { %v781_v38 = vpop.f32.mrb[8].mxu0 }
 0xf24   :  { %v785_v28 = vadd.f32 %v1180_v63, %v781_v38  ;;  %v1249_v29 = vpop.f32.mrb[9].mxu0 }
 0xf26   :  { %1405 = vtanh.f32 %v785_v28  ;;  %v1071_v31 = vmul.f32 -1.442695, %v785_v28 }
 0xf28   :  { %1407 = vpow2.f32 %v1071_v31 }
 0xf30   :  { %v1406_v30 = vpop.eup %1405 }
 0xf31   :  { %795 = vrot.lane.b32.xlu0 %v1406_v30, %s1461_s2 }
 0xf32   :  { %v1408_v32 = vpop.eup %1407 }
 0xf33   :  { %v789_v15 = vadd.f32 1.0, %v1408_v32 }
 0xf35   :  { %1409 = vrcp.f32 %v789_v15 }
 0xf3f   :  { %v1410_v33 = vpop.eup %1409 }
 0xf40   :  { %v793_v1 = vmul.f32 %v1410_v33, %v703_v18 }
 0xfa3   :  { %v796_v17 = vpop.permute.xlu0 %795 }
 0xfa4   :  { %v798_v34 = vmul.f32 %v1410_v33, %v796_v17 }
 0xfa6   :  { %800 = vrot.lane.b32.xlu1 %v798_v34, %s1461_s2 }
0x1018   :  { %v801_v21 = vpop.permute.xlu1 %800 }
0x1019   :  { %v803_v35 = vadd.f32 %v801_v21, %v793_v1 }
0x101b   :  { %1411 = vtanh.f32 %v803_v35 }
0x1025   :  { %v1412_v37 = vpop.eup %1411 }
0x1026   :  { %806 = vrot.lane.b32.xlu0 %v1412_v37, %s1461_s2 }
0x1098   :  { %v807_v40 = vpop.permute.xlu0 %806 }
0x1099   :  { %v809_v41 = vmul.f32 %v1410_v33, %v807_v40 }
0x109b   :  { %811 = vrot.lane.b32.xlu1 %v809_v41, %s1462_s10 }
0x110d   :  { %v812_v42 = vpop.permute.xlu1 %811 }
0x110e   :  { %1259 = vmatmul.mubr.msk.f32.vlgmr.msra.gmra.mrb[10].mxu1 %vm211_vm3, %v812_v42 }
0x11e1   :  { %v881_v43 = vpop.f32.mrb[10].mxu1 }
0x11e2   :  { %v885_v44 = vadd.f32 %v881_v43, %v198_v27  ;;  %v1260_v45 = vpop.f32.mrb[11].mxu1 }
0x11e4   :  { %1413 = vtanh.f32 %v885_v44  ;;  %v1073_v47 = vmul.f32 -1.442695, %v885_v44 }
0x11e6   :  { %1415 = vpow2.f32 %v1073_v47 }
0x11ee   :  { %v1414_v46 = vpop.eup %1413 }
0x11ef   :  { %895 = vrot.lane.b32.xlu0 %v1414_v46, %s1461_s2 }
0x11f0   :  { %v1416_v48 = vpop.eup %1415 }
0x11f1   :  { %v889_v49 = vadd.f32 1.0, %v1416_v48 }
0x11f3   :  { %1417 = vrcp.f32 %v889_v49 }
0x11fd   :  { %v1418_v50 = vpop.eup %1417 }
0x11fe   :  { %v893_v53 = vmul.f32 %v1418_v50, %v803_v35 }
0x1261   :  { %v896_v51 = vpop.permute.xlu0 %895 }
0x1262   :  { %v898_v52 = vmul.f32 %v1418_v50, %v896_v51 }
0x1264   :  { %900 = vrot.lane.b32.xlu1 %v898_v52, %s1461_s2 }
0x12d6   :  { %v901_v54 = vpop.permute.xlu1 %900 }
0x12d7   :  { %v903_v55 = vadd.f32 %v901_v54, %v893_v53 }
0x12d9   :  { %1419 = vtanh.f32 %v903_v55 }
0x12e3   :  { %v1420_v56 = vpop.eup %1419 }
0x12e4   :  { %906 = vrot.lane.b32.xlu0 %v1420_v56, %s1461_s2 }
0x1356   :  { %v907_v57 = vpop.permute.xlu0 %906 }
0x1357   :  { %v909_v59 = vmul.f32 %v1418_v50, %v907_v57 }
0x1359   :  { %911 = vrot.lane.b32.xlu1 %v909_v59, %s1462_s10 }
0x13cb   :  { %v912_v61 = vpop.permute.xlu1 %911 }
0x13cc   :  { %1270 = vmatmul.mubr.msk.f32.vlgmr.msra.gmra.mrb[10].mxu0 %vm211_vm3, %v912_v61 }
0x149f   :  { %v981_v62 = vpop.f32.mrb[10].mxu0 }
0x14a0   :  { %v985_v63 = vadd.f32 %v1183_v36, %v981_v62  ;;  %v1271_v0 = vpop.f32.mrb[11].mxu0 }
0x14a2   :  { %1421 = vtanh.f32 %v985_v63  ;;  %v1075_v3 = vmul.f32 -1.442695, %v985_v63 }
0x14a4   :  { %1423 = vpow2.f32 %v1075_v3 }
0x14ac   :  { %v1422_v2 = vpop.eup %1421 }
0x14ad   :  { %995 = vrot.lane.b32.xlu0 %v1422_v2, %s1461_s2 }
0x14ae   :  { %v1424_v4 = vpop.eup %1423 }
0x14af   :  { %v989_v5 = vadd.f32 1.0, %v1424_v4 }
0x14b1   :  { %1425 = vrcp.f32 %v989_v5 }
0x14bb   :  { %v1426_v6 = vpop.eup %1425 }
0x14bc   :  { %v993_v9 = vmul.f32 %v1426_v6, %v903_v55 }
0x151f   :  { %v996_v7 = vpop.permute.xlu0 %995 }
0x1520   :  { %v998_v8 = vmul.f32 %v1426_v6, %v996_v7 }
0x1522   :  { %1000 = vrot.lane.b32.xlu1 %v998_v8, %s1461_s2 }
0x1526   :  { %1011 = vrot.lane.b32.xlu1 %v1568_v14, %s1463_s0 }
0x152a   :  { %1014 = vrot.lane.b32.xlu1 %v1606_v60, %s1461_s2 }
0x1594   :  { %v1001_v10 = vpop.permute.xlu1 %1000 }
0x1595   :  { %v1003_v11 = vadd.f32 %v1001_v10, %v993_v9 }
0x1597   :  { %1427 = vtanh.f32 %v1003_v11  ;;  %1026 = vrot.lane.b32.xlu1 %v1003_v11, %s1463_s0 }
0x1598   :  { %v1012_v12 = vpop.permute.xlu1 %1011 }
0x1599   :  { %v1029_v13 = vsel %vm211_vm3, %v1547_v58, %v1012_v12 }
0x159a   :  { %v1031_v16 = vsel %vm1030_vm10, %v1029_v13, %v1584_v39 }
0x159c   :  { %v1015_v18 = vpop.permute.xlu1 %1014 }
0x159d   :  { %v1033_v14 = vsel %vm1032_vm11, %v1031_v16, %v1015_v18 }
0x159e   :  { %1037 = vst [vmem:[%s1682_s3] sm:$0xff] %v1033_v14 }
0x15a1   :  { %v1428_v60 = vpop.eup %1427 }
0x15a2   :  { %1006 = vrot.lane.b32.xlu0 %v1428_v60, %s1461_s2 }
0x15a6   :  { %1018 = vrot.lane.b32.xlu0 %v809_v41, %s1463_s0 }
0x1609   :  { %v1027_v19 = vpop.permute.xlu1 %1026 }
0x160a   :  { %1039 = vst.msk [vmem:[%s1682_s3 + $0x10] sm:$0xff] %vm211_vm3, %v1027_v19 }
0x1614   :  { %v1007_v58 = vpop.permute.xlu0 %1006 }
0x1615   :  { %v1009_v20 = vmul.f32 %v1426_v6, %v1007_v58 }
0x1617   :  { %1022 = vrot.lane.b32.xlu0 %v1009_v20, %s1461_s2 }
0x1618   :  { %v1019_v39 = vpop.permute.xlu0 %1018 }
0x1619   :  { %v1034_v22 = vsel %vm211_vm3, %v1634_v26, %v1019_v39 }
0x161a   :  { %v1035_v23 = vsel %vm1030_vm10, %v1034_v22, %v909_v59 }
0x1689   :  { %v1023_v24 = vpop.permute.xlu0 %1022 }
0x168a   :  { %v1036_v25 = vsel %vm1032_vm11, %v1035_v23, %v1023_v24 }
0x168b   :  { %1038 = vst [vmem:[%s1682_s3 + $0x8] sm:$0xff] %v1036_v25 }
0x168c   :  { %1044 = vsyncpa [#allocation3], 1 }

</bundles_post_ra>
